<compile_context>
chip_gen: v7x
topology: tpu7x:2x2x1
jax: 0.10.0
libtpu: 0.0.40
codegen_flags: <defaults>
</compile_context>

<pallas_src>
import functools
import math

import jax
import jax.numpy as jnp
import numpy as np
from jax.experimental import pallas as pl
from jax.experimental.pallas import tpu as pltpu


def bi_attention_kernel(x_ref, w_ref, b_ref, hw_ref, bias_ref,
                        atten_ref, logits_ref, *, Bt, Nv, Nq, G, M):
    NT = Nv + Nq
    P = Nv * Nq

    # --- Fused FCNet projections: one MXU call covers lin_v AND lin_q. ------
    D = x_ref.shape[-1]
    x = x_ref[...].reshape(Bt * NT, D)                                  # (Bt*NT, D)
    y = jnp.dot(x, w_ref[...], preferred_element_type=jnp.float32) + b_ref[...]
    y = y.reshape(Bt, NT, 2 * M)
    v_lin = y[:, :Nv, :M]            # (Bt, Nv, M)  v rows x Wv columns
    q_lin = y[:, Nv:, M:]            # (Bt, Nq, M)  q rows x Wq columns

    # pair[b, i*Nq + j, m] = v_lin[b, i, m] * q_lin[b, j, m]
    # Flattened (Nv*Nq) axis sits on sublanes, M on lanes: the glimpse matmul
    # result is born lane-dense with no relayout of `pair`.
    pair = (v_lin[:, :, None, :] * q_lin[:, None, :, :]).reshape(Bt, P, M)

    # Glimpse contraction, batched over the block-batch dim.  Contraction is on
    # the last dims of both operands (A.B^T form) -> no in-kernel transpose.
    hw_b = jnp.broadcast_to(hw_ref[...][None], (Bt, G, M))
    logits3 = jnp.einsum('bgm,bpm->bgp', hw_b, pair,
                         preferred_element_type=jnp.float32)            # (Bt, G, P)

    # + (h_bias + additive 0/-inf pair mask), lane-dense (Bt*G, P): one vadd.
    logits = logits3.reshape(Bt * G, P) + bias_ref[...]

    # Softmax over the flattened Nv*Nq lane axis, per (batch, glimpse) row.
    # NOTE: a fully-masked row gives NaN, identical to the PyTorch reference.
    m = jnp.max(logits, axis=-1, keepdims=True)
    e = jnp.exp(logits - m)
    s = jnp.sum(e, axis=-1, keepdims=True)
    atten = e * pl.reciprocal(s, approx=False)     # EUP reciprocal + vmul

    atten_ref[...] = atten                         # full (Bt*G, 128) tile stores
    logits_ref[...] = logits


def bi_attention(v, q, v_mask, q_mask, Wv, bv, Wq, bq, h_weight, h_bias,
                 *, block_batch=None):
    B, Nv, Dv = v.shape
    _, Nq, Dq = q.shape
    G = h_weight.shape[1]
    M = h_weight.shape[3]
    P = Nv * Nq
    NT = Nv + Nq

    # Block batch: amortize per-grid-step overhead; target ~128 MXU rows per
    # step (v5e).  On v6e/v7x with large B this can be raised toward 256 rows.
    if block_batch is None:
        block_batch = max(1, min(B, max(1, 128 // max(Nv, 1))))
    Bt = block_batch
    # Keep output blocks full 8-sublane tiles: make Bt*G a multiple of 8.
    if (Bt * G) % 8 != 0:
        per = 8 // math.gcd(8, G)
        Bt = ((Bt + per - 1) // per) * per

    # Pad batch to a multiple of Bt.  Padded rows use mask=1 so their softmax
    # stays finite (no NaN); they are sliced off below.
    B_pad = ((B + Bt - 1) // Bt) * Bt
    if B_pad != B:
        pb = B_pad - B
        v = jnp.pad(v, ((0, pb), (0, 0), (0, 0)))
        q = jnp.pad(q, ((0, pb), (0, 0), (0, 0)))
        v_mask = jnp.pad(v_mask, ((0, pb), (0, 0)), constant_values=1.0)
        q_mask = jnp.pad(q_mask, ((0, pb), (0, 0)), constant_values=1.0)

    # Fuse both FCNet linears: one (D, 2M) weight, one (1, 2M) bias, one input
    # slab (B, Nv+Nq, D).  Feature dims are zero-padded to a common D if needed.
    D = max(Dv, Dq)
    v_p = jnp.pad(v, ((0, 0), (0, 0), (0, D - Dv)))
    q_p = jnp.pad(q, ((0, 0), (0, 0), (0, D - Dq)))
    x_cat = jnp.concatenate([v_p, q_p], axis=1)                       # (B_pad, NT, D)
    W_cat = jnp.concatenate([jnp.pad(Wv, ((0, D - Dv), (0, 0))),
                             jnp.pad(Wq, ((0, D - Dq), (0, 0)))], axis=1)  # (D, 2M)
    b_cat = jnp.concatenate([bv.reshape(1, M), bq.reshape(1, M)], axis=1)  # (1, 2M)

    hw = h_weight.reshape(G, M)
    hb = h_bias.reshape(1, G, 1)

    # Combined additive bias: h_bias + (0 where valid / -inf where masked),
    # precomputed in the lane-dense (B*G, Nv*Nq) layout the kernel stores in.
    pair_valid = (v_mask[:, :, None] * q_mask[:, None, :]).reshape(B_pad, P)
    mask_bias = jnp.where(pair_valid > 0, 0.0, -jnp.inf).astype(jnp.float32)
    bias_cat = (hb + mask_bias[:, None, :]).reshape(B_pad * G, P)

    grid = (B_pad // Bt,)
    kernel = functools.partial(bi_attention_kernel,
                               Bt=Bt, Nv=Nv, Nq=Nq, G=G, M=M)

    out_shape = (
        jax.ShapeDtypeStruct((B_pad * G, P), jnp.float32),   # atten  (flat)
        jax.ShapeDtypeStruct((B_pad * G, P), jnp.float32),   # logits (flat)
    )
    in_specs = [
        pl.BlockSpec((Bt, NT, D), lambda b: (b, 0, 0)),      # fused v/q block
        pl.BlockSpec((D, 2 * M), lambda b: (0, 0)),          # fused weight
        pl.BlockSpec((1, 2 * M), lambda b: (0, 0)),          # fused bias
        pl.BlockSpec((G, M), lambda b: (0, 0)),              # glimpse weight
        pl.BlockSpec((Bt * G, P), lambda b: (b, 0)),         # h_bias + mask
    ]
    out_specs = (
        pl.BlockSpec((Bt * G, P), lambda b: (b, 0)),
        pl.BlockSpec((Bt * G, P), lambda b: (b, 0)),
    )

    atten_flat, logits_flat = pl.pallas_call(
        kernel,
        out_shape=out_shape,
        grid=grid,
        in_specs=in_specs,
        out_specs=out_specs,
        compiler_params=pltpu.CompilerParams(
            dimension_semantics=("parallel",)),              # v7x: steps shard over TCs
    )(x_cat, W_cat, b_cat, hw, bias_cat)

    atten = atten_flat[:B * G].reshape(B, G, Nv, Nq)
    logits = logits_flat[:B * G].reshape(B, G, Nv, Nq)
    return atten, logits


def reference(v, q, v_mask, q_mask, Wv, bv, Wq, bq, h_weight, h_bias):
    """Pure-JAX mirror of the PyTorch forward (eval mode)."""
    B, Nv, _ = v.shape
    _, Nq, _ = q.shape
    G = h_weight.shape[1]
    v_lin = v @ Wv + bv                                           # (B, Nv, M)
    q_lin = q @ Wq + bq                                           # (B, Nq, M)
    h = v_lin[:, None, :, :] * h_weight                           # (B, G, Nv, M)
    logits = jnp.einsum('bgvm,bqm->bgvq', h, q_lin) + h_bias      # (B, G, Nv, Nq)
    logits = jnp.where(v_mask[:, None, :, None] == 0, -jnp.inf, logits)
    logits = jnp.where(q_mask[:, None, None, :] == 0, -jnp.inf, logits)
    atten = jax.nn.softmax(logits.reshape(B, G, Nv * Nq), axis=-1)
    return atten.reshape(B, G, Nv, Nq), logits


if __name__ == "__main__":
    B, Nv, Nq = 2, 16, 8
    Dv, Dq, M, G = 32, 32, 32, 4     # v_features, q_features, mid_features, glimpses

    key = jax.random.PRNGKey(0)
    keys = jax.random.split(key, 8)

    v = jax.random.normal(keys[0], (B, Nv, Dv), jnp.float32)
    q = jax.random.normal(keys[1], (B, Nq, Dq), jnp.float32)

    # Parameters (deterministic, matching __init__ shapes; weight_norm folded).
    Wv = jax.random.normal(keys[2], (Dv, M), jnp.float32) * 0.1
    bv = jax.random.normal(keys[3], (1, M), jnp.float32) * 0.1
    Wq = jax.random.normal(keys[4], (Dq, M), jnp.float32) * 0.1
    bq = jax.random.normal(keys[5], (1, M), jnp.float32) * 0.1
    h_weight = jax.random.normal(keys[6], (1, G, 1, M), jnp.float32)   # torch: (1,G,1,M).normal_()
    h_bias = jax.random.normal(keys[7], (1, G, 1, 1), jnp.float32)     # torch: (1,G,1,1).normal_()

    # Masks: 1 = valid, 0 = padding (varying valid lengths per batch element).
    v_lens = jnp.array([13, 10])
    q_lens = jnp.array([8, 5])
    v_mask = (jnp.arange(Nv)[None, :] < v_lens[:, None]).astype(jnp.float32)  # (B, Nv)
    q_mask = (jnp.arange(Nq)[None, :] < q_lens[:, None]).astype(jnp.float32)  # (B, Nq)

    atten, logits = bi_attention(v, q, v_mask, q_mask,
                                 Wv, bv, Wq, bq, h_weight, h_bias)
    atten = jax.block_until_ready(atten)
    logits = jax.block_until_ready(logits)

    atten_ref, logits_ref = reference(v, q, v_mask, q_mask,
                                      Wv, bv, Wq, bq, h_weight, h_bias)

    assert np.allclose(np.asarray(atten), np.asarray(atten_ref), atol=1e-5, rtol=1e-5)
    assert np.allclose(np.asarray(logits), np.asarray(logits_ref), atol=1e-4, rtol=1e-4)

    print("KERNEL_OK")
</pallas_src>

<mosaic_0001>
module attributes {stable_mosaic.version = 11 : i64} {
  func.func @bi_attention_kernel(%arg0: i32, %arg1: memref<2x24x32xf32, #tpu.memory_space<vmem>>, %arg2: memref<32x64xf32, #tpu.memory_space<vmem>>, %arg3: memref<1x64xf32, #tpu.memory_space<vmem>>, %arg4: memref<4x32xf32, #tpu.memory_space<vmem>>, %arg5: memref<8x128xf32, #tpu.memory_space<vmem>>, %arg6: memref<8x128xf32, #tpu.memory_space<vmem>>, %arg7: memref<8x128xf32, #tpu.memory_space<vmem>>) attributes {dimension_semantics = [#tpu.dimension_semantics<parallel>], iteration_bounds = array<i64: 1>, scalar_prefetch = 0 : i64, scratch_operands = 0 : i64, tpu.core_type = #tpu.core_type<tc>, window_params = [{transform_indices = @transform_0, window_bounds = array<i64: 2, 24, 32>}, {pipeline_mode = #tpu.pipeline_mode<synchronous>, transform_indices = @transform_1, window_bounds = array<i64: 32, 64>}, {pipeline_mode = #tpu.pipeline_mode<synchronous>, transform_indices = @transform_2, window_bounds = array<i64: 1, 64>}, {pipeline_mode = #tpu.pipeline_mode<synchronous>, transform_indices = @transform_3, window_bounds = array<i64: 4, 32>}, {transform_indices = @transform_4, window_bounds = array<i64: 8, 128>}, {transform_indices = @transform_5, window_bounds = array<i64: 8, 128>}, {transform_indices = @transform_6, window_bounds = array<i64: 8, 128>}]} {
    %c0 = arith.constant 0 : index
    %c0_0 = arith.constant 0 : index
    %c0_1 = arith.constant 0 : index
    %0 = vector.load %arg1[%c0, %c0_0, %c0_1] : memref<2x24x32xf32, #tpu.memory_space<vmem>>, vector<2x24x32xf32>
    %1 = vector.shape_cast %0 : vector<2x24x32xf32> to vector<48x32xf32>
    %c0_2 = arith.constant 0 : index
    %c0_3 = arith.constant 0 : index
    %2 = vector.load %arg2[%c0_2, %c0_3] : memref<32x64xf32, #tpu.memory_space<vmem>>, vector<32x64xf32>
    %cst = arith.constant dense<0.000000e+00> : vector<48x64xf32>
    %3 = tpu.matmul %1, %2, %cst {dimension_numbers = #tpu.dot_dimension_numbers<[1], [0], [0], [1], [0, 0, 1, 1], [], []>} : vector<48x32xf32>, vector<32x64xf32>, vector<48x64xf32> -> vector<48x64xf32>
    %c0_4 = arith.constant 0 : index
    %c0_5 = arith.constant 0 : index
    %4 = vector.load %arg3[%c0_4, %c0_5] : memref<1x64xf32, #tpu.memory_space<vmem>>, vector<1x64xf32>
    %5 = vector.broadcast %4 : vector<1x64xf32> to vector<48x64xf32>
    %6 = arith.addf %3, %5 : vector<48x64xf32>
    %7 = vector.shape_cast %6 : vector<48x64xf32> to vector<2x24x64xf32>
    %8 = vector.extract_strided_slice %7 {offsets = [0, 0, 0], sizes = [2, 16, 32], strides = [1, 1, 1]} : vector<2x24x64xf32> to vector<2x16x32xf32>
    %9 = vector.extract_strided_slice %7 {offsets = [0, 16, 32], sizes = [2, 8, 32], strides = [1, 1, 1]} : vector<2x24x64xf32> to vector<2x8x32xf32>
    %10 = vector.shape_cast %8 : vector<2x16x32xf32> to vector<2x16x1x32xf32>
    %11 = vector.shape_cast %9 : vector<2x8x32xf32> to vector<2x1x8x32xf32>
    %12 = vector.broadcast %10 : vector<2x16x1x32xf32> to vector<2x16x8x32xf32>
    %13 = vector.broadcast %11 : vector<2x1x8x32xf32> to vector<2x16x8x32xf32>
    %14 = arith.mulf %12, %13 : vector<2x16x8x32xf32>
    %15 = vector.shape_cast %14 : vector<2x16x8x32xf32> to vector<2x128x32xf32>
    %c0_6 = arith.constant 0 : index
    %c0_7 = arith.constant 0 : index
    %16 = vector.load %arg4[%c0_6, %c0_7] : memref<4x32xf32, #tpu.memory_space<vmem>>, vector<4x32xf32>
    %17 = vector.shape_cast %16 : vector<4x32xf32> to vector<1x4x32xf32>
    %18 = vector.shape_cast %17 : vector<1x4x32xf32> to vector<1x4x32xf32>
    %19 = vector.broadcast %18 : vector<1x4x32xf32> to vector<2x4x32xf32>
    "tpu.trace_start"() <{level = 10 : i32, message = "bgm,bpm->bgp"}> : () -> ()
    %cst_8 = arith.constant dense<0.000000e+00> : vector<2x4x128xf32>
    %20 = tpu.matmul %19, %15, %cst_8 {dimension_numbers = #tpu.dot_dimension_numbers<[2], [2], [1], [1], [0, 0, 0, 1, 1, 1], [0], [0]>} : vector<2x4x32xf32>, vector<2x128x32xf32>, vector<2x4x128xf32> -> vector<2x4x128xf32>
    "tpu.trace_stop"() : () -> ()
    %21 = vector.shape_cast %20 : vector<2x4x128xf32> to vector<8x128xf32>
    %c0_9 = arith.constant 0 : index
    %c0_10 = arith.constant 0 : index
    %22 = vector.load %arg5[%c0_9, %c0_10] : memref<8x128xf32, #tpu.memory_space<vmem>>, vector<8x128xf32>
    %23 = arith.addf %21, %22 : vector<8x128xf32>
    %cst_11 = arith.constant dense<0xFF800000> : vector<8xf32>
    %24 = vector.multi_reduction <maximumf>, %23, %cst_11 [1] : vector<8x128xf32> to vector<8xf32>
    %25 = vector.shape_cast %24 : vector<8xf32> to vector<8x1xf32>
    %26 = vector.broadcast %25 : vector<8x1xf32> to vector<8x128xf32>
    %27 = arith.subf %23, %26 : vector<8x128xf32>
    %28 = math.exp %27 : vector<8x128xf32>
    %cst_12 = arith.constant dense<0.000000e+00> : vector<8xf32>
    %29 = vector.multi_reduction <add>, %28, %cst_12 [1] : vector<8x128xf32> to vector<8xf32>
    %30 = vector.shape_cast %29 : vector<8xf32> to vector<8x1xf32>
    %31 = tpu.reciprocal %30 : vector<8x1xf32> -> vector<8x1xf32>
    %32 = vector.broadcast %31 : vector<8x1xf32> to vector<8x128xf32>
    %33 = arith.mulf %28, %32 : vector<8x128xf32>
    %c0_13 = arith.constant 0 : index
    %c0_14 = arith.constant 0 : index
    %34 = vector.load %arg6[%c0_13, %c0_14] : memref<8x128xf32, #tpu.memory_space<vmem>>, vector<8x128xf32>
    tpu.vector_store %arg6[%c0_13, %c0_14], %33 {strides = array<i32>} : memref<8x128xf32, #tpu.memory_space<vmem>>, vector<8x128xf32>,
    %c0_15 = arith.constant 0 : index
    %c0_16 = arith.constant 0 : index
    %35 = vector.load %arg7[%c0_15, %c0_16] : memref<8x128xf32, #tpu.memory_space<vmem>>, vector<8x128xf32>
    tpu.vector_store %arg7[%c0_15, %c0_16], %23 {strides = array<i32>} : memref<8x128xf32, #tpu.memory_space<vmem>>, vector<8x128xf32>,
    return
  }
  func.func @transform_0(%arg0: i32) -> (i32, i32, i32) {
    %c0_i32 = arith.constant 0 : i32
    %c0_i32_0 = arith.constant 0 : i32
    %c0_i32_1 = arith.constant 0 : i32
    return %arg0, %c0_i32, %c0_i32_0 : i32, i32, i32
  }
  func.func @transform_1(%arg0: i32) -> (i32, i32) {
    %c0_i32 = arith.constant 0 : i32
    %c0_i32_0 = arith.constant 0 : i32
    %c0_i32_1 = arith.constant 0 : i32
    return %c0_i32, %c0_i32_0 : i32, i32
  }
  func.func @transform_2(%arg0: i32) -> (i32, i32) {
    %c0_i32 = arith.constant 0 : i32
    %c0_i32_0 = arith.constant 0 : i32
    %c0_i32_1 = arith.constant 0 : i32
    return %c0_i32, %c0_i32_0 : i32, i32
  }
  func.func @transform_3(%arg0: i32) -> (i32, i32) {
    %c0_i32 = arith.constant 0 : i32
    %c0_i32_0 = arith.constant 0 : i32
    %c0_i32_1 = arith.constant 0 : i32
    return %c0_i32, %c0_i32_0 : i32, i32
  }
  func.func @transform_4(%arg0: i32) -> (i32, i32) {
    %c0_i32 = arith.constant 0 : i32
    %c0_i32_0 = arith.constant 0 : i32
    return %arg0, %c0_i32 : i32, i32
  }
  func.func @transform_5(%arg0: i32) -> (i32, i32) {
    %c0_i32 = arith.constant 0 : i32
    %c0_i32_0 = arith.constant 0 : i32
    return %arg0, %c0_i32 : i32, i32
  }
  func.func @transform_6(%arg0: i32) -> (i32, i32) {
    %c0_i32 = arith.constant 0 : i32
    %c0_i32_0 = arith.constant 0 : i32
    return %arg0, %c0_i32 : i32, i32
  }
}

</mosaic_0001>

<bundles_post_ra>
// kernel: tpu_custom_call.1
= control target key start
LH: loop header
LB: loop body
LE: loop exit
PB: predicated region body
PF: predicated region fallthrough
CT: control target
= control target key end

     0   :  { %12 = vsyncpa [#allocation3], 0  ;;  %s1578_s0 = inlined_call_operand.hbm [shape: f32[2,24,32], index: 0, kind: input, shape index: {}]   ;;  %s1579_s1 = inlined_call_operand.hbm [shape: f32[32,64], index: 1, kind: input, shape index: {}]   ;;  %s1580_s2 = inlined_call_operand.vmem [shape: f32[1,64], index: 2, kind: input, shape index: {}]   ;;  %s1581_s3 = inlined_call_operand.vmem [shape: f32[4,32], index: 3, kind: input, shape index: {}]   ;;  %s1582_s4 = inlined_call_operand.vmem [shape: f32[8,128], index: 4, kind: input, shape index: {}]   ;;  %s1583_s5 = inlined_call_operand.hbm [shape: f32[8,128], index: 5, kind: output, shape index: {0}]   ;;  %s1584_s6 = inlined_call_operand.hbm [shape: f32[8,128], index: 6, kind: output, shape index: {1}]  }
   0x1   :  { %13 = vsyncpa [#allocation6], 0 }
   0x2   :  { %14 = vsyncpa [#allocation4], 0 }
   0x3   :  { %15 = vsyncpa [#allocation9], 0  ;;  %s1280_s21 = smov [#allocation2]   ;;  %s1184_s25 = scalar_lea.hbm %s1578_s0, 768 }
   0x4   :  { %s21_s22 = sshll.u32 %s1280_s21, 4  ;;  %p1185_p0 = scmp.ne.s32.totalorder %s1578_s0, %s1184_s25  ;;  %s22_s22 = int_to_ptr.vmem [resolvable:$true] %s21_s22 }
   0x5   :  { %p1188_p1 = scmp.lt.u32.totalorder %s1184_s25, %s1578_s0 }
   0x7   :  { %p1190_p2 = pnand %p1188_p1, %p1185_p0 }
   0x9   :  { %1193 = shalt.err (!%p1190_p2)
}
   0xa   :  { %s1194_s30 = scalar_lea.vmem %s22_s22, 768  ;;  %p1199_p4 = scmp.lt.s32.totalorder %s22_s22, %s22_s22 }
   0xb   :  { %p1195_p3 = scmp.ne.s32.totalorder %s22_s22, %s1194_s30  ;;  %p1200_p5 = scmp.lt.s32.totalorder %s1194_s30, %s1194_s30 }
   0xd   :  { %p1201_p6 = por %p1200_p5, %p1199_p4 }
   0xf   :  { %p1202_p7 = pnand %p1201_p6, %p1195_p3 }
  0x11   :  { %1205 = shalt.err (!%p1202_p7)
}
  0x12   :  { %s1281_s7 = smov 128   ;;  %s1282_s8 = smov 8  }
  0x13   :  { %27 = dma.hbm_to_vmem [thread:$0]  %s1578_s0, 768, %s22_s22, [#allocation3], %s1281_s7, %s1281_s7, %s1282_s8  }
  0x14   :  { %s1283_s11 = smov [#allocation5]   ;;  %s1206_s15 = scalar_lea.hbm %s1579_s1, 512 }
  0x15   :  { %s33_s12 = sshll.u32 %s1283_s11, 4  ;;  %p1207_p8 = scmp.ne.s32.totalorder %s1579_s1, %s1206_s15  ;;  %s34_s12 = int_to_ptr.vmem [resolvable:$true] %s33_s12 }
  0x16   :  { %p1210_p9 = scmp.lt.u32.totalorder %s1206_s15, %s1579_s1 }
  0x18   :  { %p1212_p10 = pnand %p1210_p9, %p1207_p8 }
  0x1a   :  { %1215 = shalt.err (!%p1212_p10)
}
  0x1b   :  { %s1216_s20 = scalar_lea.vmem %s34_s12, 512  ;;  %p1221_p12 = scmp.lt.s32.totalorder %s34_s12, %s34_s12 }
  0x1c   :  { %p1217_p11 = scmp.ne.s32.totalorder %s34_s12, %s1216_s20  ;;  %p1222_p13 = scmp.lt.s32.totalorder %s1216_s20, %s1216_s20 }
  0x1e   :  { %p1223_p0 = por %p1222_p13, %p1221_p12 }
  0x20   :  { %p1224_p1 = pnand %p1223_p0, %p1217_p11 }
  0x22   :  { %1227 = shalt.err (!%p1224_p1)
}
  0x23   :  { %39 = dma.hbm_to_vmem [thread:$0]  %s1579_s1, 512, %s34_s12, [#allocation6], %s1281_s7, %s1281_s7, %s1282_s8  }
  0x24   :  { %1272 = dma.done.wait [#allocation3], 768  }
  0x25   :  { %1273 = vsyncadd [#allocation3], 4294966528 }
  0x26   :  { %1274 = dma.done.wait [#allocation6], 512  }
  0x27   :  { %1275 = vsyncadd [#allocation6], 4294966784  ;;  %vm69_vm0 = vcmask 261120   ;;  %v58_v0 = vld [vmem:[#allocation5] sm:$0xff]  ;;  %v59_v1 = vld [vmem:[#allocation5 + $0x8] sm:$0xff]  ;;  %v1284_v12 = vmov 0.0|0.0   ;;  %v191_v25 = vlaneseq }
  0x28   :  { %v60_v2 = vld [vmem:[#allocation5 + $0x10] sm:$0xff]  ;;  %v1092_v3 = vpack.c.bf16 %v59_v1, %v58_v0  ;;  %v61_v4 = vld [vmem:[#allocation5 + $0x18] sm:$0xff]  ;;  %v54_v8 = vld [vmem:[#allocation2 + $0x10] sm:$0xff]  ;;  %1100 = vmatprep.subr.bf16.mxu1 %v1284_v12  ;;  %s1285_s23 = smov 96   ;;  %v1286_v23 = vmov 1966171168  }
  0x29   :  { %v52_v5 = vld [vmem:[#allocation2] sm:$0xff]  ;;  %v1096_v6 = vpack.c.bf16 %v61_v4, %v60_v2  ;;  %v53_v7 = vld [vmem:[#allocation2 + $0x8] sm:$0xff]  ;;  %v55_v9 = vld [vmem:[#allocation2 + $0x18] sm:$0xff]  ;;  %v189_v24 = vunpack.c.l.s4 %v1286_v23  ;;  %v1365_v28 = vshrl.u32 %v191_v25, 7  ;;  %vm1287_vm1 = vmmov 0  }
  0x2a   :  { %1013 = vmatprep.mubr.msk.f32.mxu0 %vm69_vm0, %v52_v5  ;;  %1093 = vmatprep.subr.bf16.mxu0 %v1092_v3  ;;  %v56_v10 = vld [vmem:[#allocation2 + $0x20] sm:$0xff]  ;;  %v57_v11 = vld [vmem:[#allocation2 + $0x28] sm:$0xff]  ;;  %v1288_v42 = vmov 0.0   ;;  %vm1403_vm2 = vmpackc.low %vm69_vm0, %vm69_vm0  ;;  %v1290_v58 = vmov 1985246804  }
  0x2b   :  { %1095 = vmatpush3.bf16.msra.mxu0 %v1092_v3  ;;  %v920_v13 = vld [vmem:[%s1580_s2] ss:$0 sm:$0xff]  ;;  %v190_v27 = vunpack.c.0.s8 %v189_v24  ;;  %v1382_v37 = vsub.s32 0, %v1365_v28  ;;  %1054 = vmatprep.mubr.msk.f32.mxu1 %vm1287_vm1, %v1288_v42 }
  0x2c   :  { %1097 = vmatprep.subr.bf16.mxu0 %v1096_v6 }
  0x2d   :  { %v1370_v31 = vsub.s32 %v190_v27, %v1365_v28 }
  0x2f   :  { %1099 = vmatpush3.bf16.msra.mxu0 %v1096_v6 }
  0x30   :  { %1132 = vmatprep.subr.bf16.mxu0 %v1284_v12 }
  0x32   :  { %1014 = vmatmul.mubr.msk.f32.vlgmr.msra.gmra.mrb[0].mxu0 %vm69_vm0, %v53_v7 }
  0x33   :  { %1016 = vmatprep.mubr.msk.f32.mxu0 %vm69_vm0, %v54_v8 }
  0x36   :  { %1017 = vmatmul.mubr.msk.f32.gmra.mrb[2].mxu0 %vm69_vm0, %v55_v9 }
  0x37   :  { %1019 = vmatprep.mubr.msk.f32.mxu0 %vm69_vm0, %v56_v10 }
  0x3a   :  { %1020 = vmatmul.mubr.msk.f32.gmra.mrb[4].mxu0 %vm69_vm0, %v57_v11 }
  0x3b   :  { %1089 = vmatprep.mubr.msk.f32.mxu0 %vm1287_vm1, %v1288_v42 }
 0x105   :  { %v1015_v14 = vpop.f32.mrb[0].mxu0 }
 0x106   :  { %v1363_v15 = vadd.f32 %v1015_v14, %v920_v13  ;;  %v154_v16 = vpop.f32.mrb[1].mxu0 }
 0x107   :  { %v155_v17 = vadd.f32 %v920_v13, %v154_v16 }
 0x109   :  { %v1018_v18 = vpop.f32.mrb[2].mxu0  ;;  %v194_v43 = vrot.slane %v155_v17, %v1370_v31  ;;  %v187_v48 = vcombine.high %v155_v17, %v155_v17 }
 0x10a   :  { %v170_v19 = vadd.f32 %v1018_v18, %v920_v13  ;;  %v164_v20 = vpop.f32.mrb[3].mxu0 }
 0x10b   :  { %v165_v21 = vadd.f32 %v920_v13, %v164_v20  ;;  %v202_v44 = vcombine.high %v194_v43, %v194_v43  ;;  %v210_v45 = vrot.slane %v194_v43, %v1370_v31  ;;  %v201_v52 = vrot.slane %v187_v48, %v1370_v31 }
 0x10c   :  { %v292_v47 = vrot.slane %v170_v19, %v1370_v31  ;;  %v285_v63 = vcombine.high %v170_v19, %v170_v19 }
 0x10d   :  { %v1021_v22 = vpop.f32.mrb[4].mxu0  ;;  %545 = vrot.lane.b32.xlu0 %v165_v21, %s1285_s23  ;;  %v224_v46 = vrot.slane %v202_v44, %v1370_v31  ;;  %v386_v49 = vrot.slane %v210_v45, %v1382_v37  ;;  %v232_v54 = vcombine.high %v210_v45, %v210_v45  ;;  %v203_v62 = vcombine.high %v201_v52, %v201_v52 }
 0x10e   :  { %v174_v26 = vpop.f32.mrb[5].mxu0  ;;  %v180_v29 = vadd.f32 %v1021_v22, %v920_v13  ;;  %v300_v50 = vcombine.high %v292_v47, %v292_v47  ;;  %v308_v59 = vrot.slane %v292_v47, %v1370_v31  ;;  %v217_v6 = vrot.slane %v201_v52, %v1370_v31 }
 0x10f   :  { %v1367_v30 = vadd.f32 %v920_v13, %v174_v26  ;;  %v390_v51 = vrot.slane %v224_v46, %v1382_v37  ;;  %v234_v55 = vcombine.high %v224_v46, %v224_v46  ;;  %v394_v0 = vrot.slane %v232_v54, %v1382_v37 }
 0x110   :  { %v322_v60 = vrot.slane %v300_v50, %v1370_v31  ;;  %v450_v2 = vrot.slane %v308_v59, %v1382_v37  ;;  %v231_v7 = vrot.slane %v203_v62, %v1370_v31  ;;  %v299_v8 = vrot.slane %v285_v63, %v1370_v31 }
 0x111   :  { %547 = vrot.lane.b32.xlu0 %v180_v29, %s1285_s23  ;;  %v334_v32 = vcombine.high %v1367_v30, %v1367_v30  ;;  %v398_v1 = vrot.slane %v234_v55, %v1382_v37  ;;  %v330_v10 = vcombine.high %v308_v59, %v308_v59  ;;  %v402_v18 = vrot.slane %v217_v6, %v1382_v37 }
 0x112   :  { %v454_v3 = vrot.slane %v322_v60, %v1382_v37  ;;  %v332_v11 = vcombine.high %v322_v60, %v322_v60  ;;  %v406_v19 = vrot.slane %v231_v7, %v1382_v37  ;;  %v301_v20 = vcombine.high %v299_v8, %v299_v8 }
 0x113   :  { %v348_v33 = vrot.slane %v334_v32, %v1370_v31  ;;  %v458_v21 = vrot.slane %v330_v10, %v1382_v37  ;;  %v243_v32 = vrot.slane %v1363_v15, %v1370_v31 }
 0x114   :  { %v462_v22 = vrot.slane %v332_v11, %v1382_v37 }
 0x115   :  { %v350_v34 = vcombine.high %v348_v33, %v348_v33  ;;  %v1376_v35 = vrot.slane %v348_v33, %v1370_v31  ;;  %v233_v33 = vcombine.high %v217_v6, %v217_v6  ;;  %v251_v43 = vcombine.high %v243_v32, %v243_v32 }
 0x116   :  { %v259_v52 = vrot.slane %v243_v32, %v1370_v31 }
 0x117   :  { %v1379_v36 = vrot.slane %v350_v34, %v1370_v31  ;;  %v380_v38 = vcombine.high %v1376_v35, %v1376_v35  ;;  %v410_v44 = vrot.slane %v233_v33, %v1382_v37  ;;  %v273_v54 = vrot.slane %v251_v43, %v1370_v31 }
 0x118   :  { %v418_v62 = vrot.slane %v259_v52, %v1382_v37  ;;  %v281_v6 = vcombine.high %v259_v52, %v259_v52 }
 0x119   :  { %v382_v39 = vcombine.high %v1379_v36, %v1379_v36  ;;  %v506_v40 = vrot.slane %v380_v38, %v1382_v37  ;;  %v235_v38 = vcombine.high %v231_v7, %v231_v7  ;;  %v422_v63 = vrot.slane %v273_v54, %v1382_v37 }
 0x11a   :  { %v283_v7 = vcombine.high %v273_v54, %v273_v54  ;;  %v502_v52 = vrot.slane %v1379_v36, %v1382_v37 }
 0x11b   :  { %v510_v41 = vrot.slane %v382_v39, %v1382_v37  ;;  %v315_v39 = vrot.slane %v299_v8, %v1370_v31  ;;  %v414_v47 = vrot.slane %v235_v38, %v1382_v37 }
 0x11d   :  { %v466_v45 = vrot.slane %v315_v39, %v1382_v37  ;;  %v331_v55 = vcombine.high %v315_v39, %v315_v39 }
 0x17f   :  { %v1397_v53 = vpop.permute.xlu0 %545 }
 0x180   :  { %v551_v56 = vmul.f32 %v1397_v53, %v386_v49  ;;  %v552_v57 = vmul.f32 %v1397_v53, %v390_v51  ;;  %v553_v4 = vmul.f32 %v1397_v53, %v394_v0  ;;  %v554_v5 = vmul.f32 %v1397_v53, %v398_v1 }
 0x181   :  { %v555_v27 = vmul.f32 %v1397_v53, %v402_v18  ;;  %v556_v29 = vmul.f32 %v1397_v53, %v406_v19  ;;  %v557_v50 = vmul.f32 %v1397_v53, %v410_v44  ;;  %v558_v51 = vmul.f32 %v1397_v53, %v414_v47 }
 0x182   :  { %v1101_v61 = vpack.c.bf16 %v552_v57, %v551_v56  ;;  %v1105_v17 = vpack.c.bf16 %v554_v5, %v553_v4  ;;  %v341_v57 = vrot.slane %v1367_v30, %v1370_v31  ;;  %v474_v0 = vrot.slane %v331_v55, %v1382_v37 }
 0x183   :  { %v1421_v9 = vpop.permute.xlu0 %547  ;;  %v1109_v42 = vpack.c.bf16 %v556_v29, %v555_v27  ;;  %v1113_v60 = vpack.c.bf16 %v558_v51, %v557_v50  ;;  %v560_v4 = vmul.f32 %v1397_v53, %v422_v63  ;;  %v498_v51 = vrot.slane %v1376_v35, %v1382_v37 }
 0x184   :  { %1103 = vmatpush3.bf16.xpose.msk.msra.mxu1 %vm1403_vm2, %v1101_v61  ;;  %v567_v13 = vmul.f32 %v1421_v9, %v450_v2  ;;  %v568_v14 = vmul.f32 %v1421_v9, %v454_v3  ;;  %v1436_v23 = vmul.f32 %v1421_v9, %v506_v40  ;;  %v1439_v24 = vmul.f32 %v1421_v9, %v510_v41 }
 0x185   :  { %1104 = vmatprep.subr.bf16.mxu1 %v1284_v12  ;;  %v569_v25 = vmul.f32 %v1421_v9, %v458_v21  ;;  %v570_v26 = vmul.f32 %v1421_v9, %v462_v22  ;;  %v329_v40 = vrot.slane %v301_v20, %v1370_v31  ;;  %v571_v48 = vmul.f32 %v1421_v9, %v466_v45 }
 0x186   :  { %v1133_v16 = vpack.c.bf16 %v568_v14, %v567_v13  ;;  %v1161_v34 = vpack.c.bf16 %v1439_v24, %v1436_v23  ;;  %v236_v61 = vcombine.high %v1363_v15, %v1363_v15  ;;  %v349_v2 = vcombine.high %v341_v57, %v341_v57 }
 0x187   :  { %v1137_v41 = vpack.c.bf16 %v570_v26, %v569_v25  ;;  %v470_v46 = vrot.slane %v329_v40, %v1382_v37  ;;  %v333_v56 = vcombine.high %v329_v40, %v329_v40  ;;  %v573_v15 = vmul.f32 %v1421_v9, %v474_v0 }
 0x188   :  { %1135 = vmatpush3.bf16.xpose.msk.msra.mxu0 %vm1403_vm2, %v1133_v16  ;;  %v559_v3 = vmul.f32 %v1397_v53, %v418_v62  ;;  %v250_v5 = vrot.slane %v236_v61, %v1370_v31  ;;  %v357_v8 = vrot.slane %v341_v57, %v1370_v31  ;;  %v371_v10 = vrot.slane %v349_v2, %v1370_v31 }
 0x189   :  { %1136 = vmatprep.subr.bf16.mxu0 %v1284_v12  ;;  %v572_v49 = vmul.f32 %v1421_v9, %v470_v46  ;;  %v478_v1 = vrot.slane %v333_v56, %v1382_v37  ;;  %v426_v16 = vrot.slane %v281_v6, %v1382_v37  ;;  %v579_v55 = vmul.f32 %v1421_v9, %v498_v51 }
 0x18a   :  { %v1117_v13 = vpack.c.bf16 %v560_v4, %v559_v3  ;;  %v252_v14 = vcombine.high %v250_v5, %v250_v5  ;;  %v482_v18 = vrot.slane %v357_v8, %v1382_v37  ;;  %v486_v19 = vrot.slane %v371_v10, %v1382_v37 }
 0x18b   :  { %v1141_v59 = vpack.c.bf16 %v572_v49, %v571_v48  ;;  %v574_v30 = vmul.f32 %v1421_v9, %v478_v1  ;;  %v561_v22 = vmul.f32 %v1397_v53, %v426_v16  ;;  %v266_v26 = vrot.slane %v250_v5, %v1370_v31 }
 0x18c   :  { %1107 = vmatpush3.bf16.xpose.msk.msra.mxu1 %vm1403_vm2, %v1105_v17  ;;  %v430_v17 = vrot.slane %v283_v7, %v1382_v37  ;;  %v575_v20 = vmul.f32 %v1421_v9, %v482_v18  ;;  %v576_v21 = vmul.f32 %v1421_v9, %v486_v19  ;;  %v280_v27 = vrot.slane %v252_v14, %v1370_v31 }
 0x18d   :  { %1108 = vmatprep.subr.bf16.mxu1 %v1284_v12  ;;  %v1145_v11 = vpack.c.bf16 %v574_v30, %v573_v15  ;;  %v379_v29 = vcombine.high %v357_v8, %v357_v8  ;;  %v381_v32 = vcombine.high %v371_v10, %v371_v10  ;;  %v434_v39 = vrot.slane %v266_v26, %v1382_v37 }
 0x18e   :  { %v562_v25 = vmul.f32 %v1397_v53, %v430_v17  ;;  %v1149_v33 = vpack.c.bf16 %v576_v21, %v575_v20  ;;  %v438_v40 = vrot.slane %v280_v27, %v1382_v37  ;;  %v282_v46 = vcombine.high %v266_v26, %v266_v26 }
 0x18f   :  { %v563_v44 = vmul.f32 %v1397_v53, %v434_v39  ;;  %v284_v47 = vcombine.high %v280_v27, %v280_v27  ;;  %v580_v56 = vmul.f32 %v1421_v9, %v502_v52  ;;  %v1289_v23 = vmov 839922192  }
 0x190   :  { %1139 = vmatpush3.bf16.xpose.msk.msra.mxu0 %vm1403_vm2, %v1137_v41  ;;  %v1121_v38 = vpack.c.bf16 %v562_v25, %v561_v22  ;;  %v490_v41 = vrot.slane %v379_v29, %v1382_v37  ;;  %v564_v45 = vmul.f32 %v1397_v53, %v438_v40  ;;  %v442_v50 = vrot.slane %v282_v46, %v1382_v37 }
 0x191   :  { %1140 = vmatprep.subr.bf16.mxu0 %v1284_v12  ;;  %v446_v54 = vrot.slane %v284_v47, %v1382_v37  ;;  %v1157_v57 = vpack.c.bf16 %v580_v56, %v579_v55  ;;  %v837_v24 = vunpack.c.l.s4 %v1289_v23 }
 0x192   :  { %v577_v31 = vmul.f32 %v1421_v9, %v490_v41  ;;  %v1125_v49 = vpack.c.bf16 %v564_v45, %v563_v44  ;;  %v565_v35 = vmul.f32 %v1397_v53, %v442_v50 }
 0x193   :  { %v566_v36 = vmul.f32 %v1397_v53, %v446_v54  ;;  %v838_v2 = vunpack.c.0.s8 %v837_v24 }
 0x194   :  { %1111 = vmatpush3.bf16.xpose.msk.msra.mxu1 %vm1403_vm2, %v1109_v42  ;;  %v494_v42 = vrot.slane %v381_v32, %v1382_v37  ;;  %v583_v37 = vld [vmem:[%s1581_s3] sm:$0xf]  ;;  %s1291_s3 = smov [#allocation8]  }
 0x195   :  { %1112 = vmatprep.subr.bf16.mxu1 %v1284_v12  ;;  %v841_v30 = vsub.s32 %v838_v2, %v1365_v28 }
 0x196   :  { %v578_v43 = vmul.f32 %v1421_v9, %v494_v42 }
 0x198   :  { %1143 = vmatpush3.bf16.xpose.msk.msra.mxu0 %vm1403_vm2, %v1141_v59  ;;  %v1153_v48 = vpack.c.bf16 %v578_v43, %v577_v31  ;;  %v1129_v59 = vpack.c.bf16 %v566_v36, %v565_v35 }
 0x199   :  { %1144 = vmatprep.subr.bf16.mxu0 %v1284_v12 }
 0x19c   :  { %1115 = vmatpush3.bf16.xpose.msk.msra.mxu1 %vm1403_vm2, %v1113_v60 }
 0x19d   :  { %1116 = vmatprep.subr.bf16.mxu1 %v1284_v12 }
 0x1a0   :  { %1147 = vmatpush3.bf16.xpose.msk.msra.mxu0 %vm1403_vm2, %v1145_v11 }
 0x1a1   :  { %1148 = vmatprep.subr.bf16.mxu0 %v1284_v12 }
 0x1a4   :  { %1119 = vmatpush3.bf16.xpose.msk.msra.mxu1 %vm1403_vm2, %v1117_v13 }
 0x1a5   :  { %1120 = vmatprep.subr.bf16.mxu1 %v1284_v12 }
 0x1a8   :  { %1151 = vmatpush3.bf16.xpose.msk.msra.mxu0 %vm1403_vm2, %v1149_v33 }
 0x1a9   :  { %1152 = vmatprep.subr.bf16.mxu0 %v1284_v12 }
 0x1ac   :  { %1123 = vmatpush3.bf16.xpose.msk.msra.mxu1 %vm1403_vm2, %v1121_v38 }
 0x1ad   :  { %1124 = vmatprep.subr.bf16.mxu1 %v1284_v12 }
 0x1b0   :  { %1155 = vmatpush3.bf16.xpose.msk.msra.mxu0 %vm1403_vm2, %v1153_v48 }
 0x1b1   :  { %1156 = vmatprep.subr.bf16.mxu0 %v1284_v12 }
 0x1b4   :  { %1127 = vmatpush3.bf16.xpose.msk.msra.mxu1 %vm1403_vm2, %v1125_v49 }
 0x1b5   :  { %1128 = vmatprep.subr.bf16.mxu1 %v1284_v12 }
 0x1b8   :  { %1159 = vmatpush3.bf16.xpose.msk.msra.mxu0 %vm1403_vm2, %v1157_v57 }
 0x1b9   :  { %1160 = vmatprep.subr.bf16.mxu0 %v1284_v12  ;;  %v823_v12 = vld [vmem:[%s1582_s4] sm:$0xff]  ;;  %s906_s4 = sshll.u32 %s1291_s3, 4  ;;  %s907_s4 = int_to_ptr.vmem [resolvable:$true] %s906_s4 }
 0x1ba   :  { %v825_v60 = vcombine.high %v823_v12, %v823_v12  ;;  %s1228_s27 = scalar_lea.vmem %s907_s4, 128  ;;  %p1233_p3 = scmp.lt.s32.totalorder %s907_s4, %s907_s4 }
 0x1bb   :  { %p1229_p2 = scmp.ne.s32.totalorder %s907_s4, %s1228_s27  ;;  %p1234_p4 = scmp.lt.s32.totalorder %s1228_s27, %s1228_s27 }
 0x1bc   :  { %1131 = vmatpush3.bf16.xpose.msk.msra.mxu1 %vm1403_vm2, %v1129_v59 }
 0x1bd   :  { %p1235_p5 = por %p1234_p4, %p1233_p3 }
 0x1bf   :  { %p1236_p6 = pnand %p1235_p5, %p1229_p2 }
 0x1c0   :  { %1163 = vmatpush3.bf16.xpose.msk.msra.mxu0 %vm1403_vm2, %v1161_v34  ;;  %v844_v34 = vunpack.c.l.s4 %v1290_v58 }
 0x1c2   :  { %v845_v15 = vunpack.c.0.s8 %v844_v34 }
 0x1c3   :  { %1055 = vmatmul.mubr.msk.f32.vlgmr.msra.gmra.mrb[0].mxu1 %vm69_vm0, %v583_v37 }
 0x1c4   :  { %v848_v3 = vsub.s32 %v845_v15, %v1365_v28 }
 0x1c7   :  { %1090 = vmatmul.mubr.msk.f32.vlgmr.msra.gmra.mrb[6].mxu0 %vm69_vm0, %v583_v37 }
 0x296   :  { %v701_v53 = vpop.f32.mrb[0].mxu1 }
 0x297   :  { %v1056_v9 = vpop.f32.mrb[1].mxu1  ;;  %v827_v61 = vadd.f32 %v823_v12, %v701_v53 }
 0x29a   :  { %v819_v62 = vpop.f32.mrb[6].mxu0 }
 0x29b   :  { %v828_v63 = vadd.f32 %v825_v60, %v819_v62  ;;  %v1091_v0 = vpop.f32.mrb[7].mxu0 }
 0x29d   :  { %v831_v1 = vcombine.low %v827_v61, %v828_v63 }
 0x29f   :  { %833 = vmax.xlane.f32.xlu1 %v831_v1  ;;  %889 = vst [vmem:[#allocation8] sm:$0xff] %v831_v1 }
 0x32c   :  { %v834_v4 = vpop.xlane.xlu1 %833 }
 0x32d   :  { %v842_v5 = vrot.slane %v834_v4, %v841_v30  ;;  %v849_v6 = vrot.slane %v834_v4, %v848_v3 }
 0x32f   :  { %v852_v7 = vsub.f32 %v827_v61, %v842_v5  ;;  %v853_v8 = vsub.f32 %v828_v63, %v849_v6 }
 0x331   :  { %v854_v10 = vmul.f32 1.442695, %v852_v7  ;;  %v856_v11 = vmul.f32 1.442695, %v853_v8 }
 0x333   :  { %1178 = vpow2.f32 %v854_v10 }
 0x334   :  { %1180 = vpow2.f32 %v856_v11 }
 0x33d   :  { %v1179_v13 = vpop.eup %1178 }
 0x33e   :  { %v1181_v14 = vpop.eup %1180 }
 0x33f   :  { %v860_v16 = vcombine.low %v1179_v13, %v1181_v14 }
 0x341   :  { %862 = vadd.xlane.f32.xlu1 %v860_v16 }
 0x342   :  { %1239 = shalt.err (!%p1236_p6)
}
 0x343   :  { %s1240_s30 = scalar_lea.hbm %s1584_s6, 128 }
 0x344   :  { %p1241_p7 = scmp.ne.s32.totalorder %s1584_s6, %s1240_s30  ;;  %p1244_p8 = scmp.lt.u32.totalorder %s1240_s30, %s1584_s6 }
 0x346   :  { %p1246_p9 = pnand %p1244_p8, %p1241_p7 }
 0x348   :  { %1249 = shalt.err (!%p1246_p9)
}
 0x349   :  { %909 = dma.vmem_to_hbm [thread:$0]  %s907_s4, 128, %s1584_s6, [#allocation9]  }
 0x34a   :  { %s1292_s13 = smov [#allocation7]  }
 0x34b   :  { %s896_s14 = sshll.u32 %s1292_s13, 4  ;;  %s897_s14 = int_to_ptr.vmem [resolvable:$true] %s896_s14 }
 0x34c   :  { %s1250_s15 = scalar_lea.vmem %s897_s14, 128  ;;  %p1255_p11 = scmp.lt.s32.totalorder %s897_s14, %s897_s14 }
 0x34d   :  { %p1251_p10 = scmp.ne.s32.totalorder %s897_s14, %s1250_s15  ;;  %p1256_p12 = scmp.lt.s32.totalorder %s1250_s15, %s1250_s15 }
 0x34f   :  { %p1257_p13 = por %p1256_p12, %p1255_p11 }
 0x351   :  { %p1258_p0 = pnand %p1257_p13, %p1251_p10 }
 0x3ce   :  { %v863_v28 = vpop.xlane.xlu1 %862 }
 0x3cf   :  { %1182 = vrcp.f32 %v863_v28 }
 0x3d9   :  { %v1183_v17 = vpop.eup %1182 }
 0x3da   :  { %v872_v18 = vrot.slane %v1183_v17, %v841_v30  ;;  %v879_v19 = vrot.slane %v1183_v17, %v848_v3 }
 0x3dc   :  { %v882_v20 = vmul.f32 %v1179_v13, %v872_v18  ;;  %v883_v21 = vmul.f32 %v1181_v14, %v879_v19 }
 0x3de   :  { %v886_v22 = vcombine.low %v882_v20, %v883_v21 }
 0x3e0   :  { %888 = vst [vmem:[#allocation7] sm:$0xff] %v886_v22 }
 0x3e1   :  { %1261 = shalt.err (!%p1258_p0)
}
 0x3e2   :  { %s1262_s17 = scalar_lea.hbm %s1583_s5, 128 }
 0x3e3   :  { %p1263_p1 = scmp.ne.s32.totalorder %s1583_s5, %s1262_s17  ;;  %p1266_p2 = scmp.lt.u32.totalorder %s1262_s17, %s1583_s5 }
 0x3e5   :  { %p1268_p3 = pnand %p1266_p2, %p1263_p1 }
 0x3e7   :  { %1271 = shalt.err (!%p1268_p3)
}
 0x3e8   :  { %899 = dma.vmem_to_hbm [thread:$0]  %s897_s14, 128, %s1583_s5, [#allocation4]  }
 0x3e9   :  { %1276 = dma.done.wait [#allocation4], 128  }
 0x3ea   :  { %1277 = vsyncadd [#allocation4], 4294967168 }
 0x3eb   :  { %1278 = dma.done.wait [#allocation9], 128  }
 0x3ec   :  { %1279 = vsyncadd [#allocation9], 4294967168 }
 0x3ed   :  { %916 = vsyncpa [#allocation3], 1 }
 0x3ee   :  { %917 = vsyncpa [#allocation6], 1 }
 0x3ef   :  { %918 = vsyncpa [#allocation4], 1 }
 0x3f0   :  { %919 = vsyncpa [#allocation9], 1 }

</bundles_post_ra>
